<compile_context>
chip_gen: v7x
topology: tpu7x:2x2x1
jax: 0.10.0
libtpu: 0.0.40
codegen_flags: <defaults>
</compile_context>

<pallas_src>
import functools
import math

import jax
import jax.numpy as jnp
from jax.experimental import pallas as pl
from jax.experimental.pallas import tpu as pltpu


def _cdiv(a, b):
    return -(-a // b)


def _attention_fusion_kernel(n_inputs, n_o, n_o_pad, c_ins, c_max, *refs):
    """refs = [x_0 .. x_{n_inputs-1}, w_slab, out].

    x_i    : (C_i, T)   tokens ride the 128-wide lane axis, channels on sublanes
    w_slab : (n_inputs, 2*n_o_pad, c_max+1)
             rows [0, n_o)               -> scl*(Wq @ Wk_i)   (Q fold)
             rows [n_o_pad, n_o_pad+n_o) -> Wv_i
             column c_max                -> fused bias
    out    : (n_o, T)
    """
    x_refs = refs[:n_inputs]
    w_ref = refs[n_inputs]
    out_ref = refs[-1]

    acc = jnp.zeros(out_ref.shape, jnp.float32)           # (n_o, T)
    for i in range(n_inputs):
        c_i = c_ins[i]
        x = x_refs[i][...]                                # (C_i, T)
        slab = w_ref[i]                                   # (2*n_o_pad, c_max+1)
        w = slab[:, :c_i]                                 # (2*n_o_pad, C_i)
        b = slab[:, c_max:c_max + 1]                      # (2*n_o_pad, 1)

        # Single fused MXU pass per input: [q; v] = W @ x + b (q already
        # carries the folded Wq projection and the 1/sqrt(n_e) scale).
        qv = jnp.dot(w, x, preferred_element_type=jnp.float32)
        qv = qv + b
        qT = qv[:n_o, :]                                  # (n_o, T)
        vT = qv[n_o_pad:n_o_pad + n_o, :]                 # (n_o, T)

        # Softmax over the (sublane) output-channel axis, matching torch's
        # softmax(..., dim=-1) on the channels-last tensor.  The denominator
        # reciprocal goes to the otherwise-idle EUP slot (approx, ~1e-3).
        s = qT - jnp.max(qT, axis=0, keepdims=True)
        e = jnp.exp(s)
        denom = jnp.sum(e, axis=0, keepdims=True)         # (1, T)
        att = e * pl.reciprocal(denom, approx=True)

        acc = acc + att * vT

    out_ref[...] = acc.astype(out_ref.dtype)


def _pick_block_t(hw, n_b, bytes_per_token, requested=8192,
                  vmem_budget_bytes=28 * 1024 * 1024, min_steps=4):
    """Token-tile size: a multiple of 128 lanes, as large as the VMEM budget
    allows (double-buffered in + out), capped to the padded spatial extent and
    shrunk until the grid has >= min_steps steps (feeds both v7x cores)."""
    hw_ceil = _cdiv(hw, 128) * 128
    cap = max(128, (vmem_budget_bytes // max(bytes_per_token, 1)) // 128 * 128)
    bt = max(128, (min(int(requested), cap, hw_ceil) // 128) * 128)
    while bt > 128 and n_b * _cdiv(hw_ceil, bt) < min_steps:
        bt = max(128, ((bt // 2) // 128) * 128)
    return bt


def attention_fusion(xs, params, channels_out, n_embed, block_t=8192):
    """Pallas implementation of AttentionFusion.forward.

    xs:      list of (n_b, C_i, H, W) arrays (NCHW, like torch).
    params:  dict with 'wq' (n_o, n_e), 'bq' (n_o,),
             'wk' list of (n_e, C_i), 'bk' list of (n_e,),
             'wv' list of (n_o, C_i), 'bv' list of (n_o,).
    returns: (n_b, n_o, W, H) -- matches torch's .view(width, height) + permute.
    """
    n_inputs = len(xs)
    n_b, _, H, W = xs[0].shape
    dtype = xs[0].dtype
    itemsize = jnp.dtype(dtype).itemsize
    hw = H * W
    n_o = int(channels_out)
    n_e = int(n_embed)
    scl = 1.0 / math.sqrt(float(n_e))
    c_ins = tuple(int(x.shape[1]) for x in xs)
    c_max = max(c_ins)
    n_o_pad = _cdiv(n_o, 8) * 8
    rows = 2 * n_o_pad

    # Token-tile size from a VMEM budget (stays well under v7x's 64 MiB VMEM).
    bytes_per_token = 2 * (sum(c_ins) + n_o) * itemsize
    bt = _pick_block_t(hw, n_b, bytes_per_token, requested=block_t)
    hw_pad = _cdiv(hw, bt) * bt

    # NCHW is already channel-major: (n_b, C_i, H*W) is a free reshape.  Pad
    # the flat token axis to a block multiple so the last dim stays lane-dense
    # (unmasked vector stores) and the grid keeps its megacore parallelism.
    x_cm = []
    for x in xs:
        xc = x.reshape(n_b, x.shape[1], hw)
        if hw_pad != hw:
            xc = jnp.pad(xc, ((0, 0), (0, 0), (0, hw_pad - hw)))
        x_cm.append(xc)

    # Fold the Q projection (+ softmax scale) into the K weights, then pack all
    # per-input [q; v] weights and biases into ONE padded constant slab.
    wq = jnp.asarray(params["wq"], jnp.float32)           # (n_o, n_e)
    bq = jnp.asarray(params["bq"], jnp.float32)           # (n_o,)
    slabs = []
    for i in range(n_inputs):
        c_i = c_ins[i]
        wk = jnp.asarray(params["wk"][i], jnp.float32)    # (n_e, C_i)
        bk = jnp.asarray(params["bk"][i], jnp.float32)    # (n_e,)
        wv = jnp.asarray(params["wv"][i], jnp.float32)    # (n_o, C_i)
        bv = jnp.asarray(params["bv"][i], jnp.float32)    # (n_o,)
        wq_eff = scl * (wq @ wk)                          # (n_o, C_i)
        bq_eff = scl * (wq @ bk + bq)                     # (n_o,)
        slab = jnp.zeros((rows, c_max + 1), jnp.float32)
        slab = slab.at[:n_o, :c_i].set(wq_eff)
        slab = slab.at[:n_o, c_max].set(bq_eff)
        slab = slab.at[n_o_pad:n_o_pad + n_o, :c_i].set(wv)
        slab = slab.at[n_o_pad:n_o_pad + n_o, c_max].set(bv)
        slabs.append(slab)
    w_all = jnp.stack(slabs, axis=0)                      # (n_in, rows, c_max+1)

    in_specs = [pl.BlockSpec((None, c, bt), lambda b, t: (b, 0, t))
                for c in c_ins]
    in_specs.append(pl.BlockSpec(w_all.shape, lambda b, t: (0, 0, 0)))

    kernel = functools.partial(
        _attention_fusion_kernel, n_inputs, n_o, n_o_pad, c_ins, c_max)

    # Advisory cost estimate so XLA can schedule/overlap around the call.
    flops = (2 * n_b * hw_pad * sum(rows * c for c in c_ins)
             + 6 * n_b * hw_pad * n_inputs * n_o)
    cost = pl.CostEstimate(
        flops=int(flops),
        transcendentals=int(n_b * hw_pad * n_inputs * n_o),
        bytes_accessed=int(itemsize * n_b * hw_pad * (sum(c_ins) + n_o)
                           + w_all.size * 4),
    )

    out_cm = pl.pallas_call(
        kernel,
        out_shape=jax.ShapeDtypeStruct((n_b, n_o, hw_pad), dtype),
        grid_spec=pltpu.PrefetchScalarGridSpec(
            num_scalar_prefetch=0,
            grid=(n_b, hw_pad // bt),
            in_specs=in_specs,
            # Lane-dense output: n_o on sublanes, bt tokens on lanes.
            out_specs=pl.BlockSpec((None, n_o, bt), lambda b, t: (b, 0, t)),
        ),
        compiler_params=pltpu.CompilerParams(
            dimension_semantics=("parallel", "parallel"),
            vmem_limit_bytes=48 * 1024 * 1024,
        ),
        cost_estimate=cost,
    )(*x_cm, w_all)

    if hw_pad != hw:
        out_cm = out_cm[:, :, :hw]
    # torch: (att*v).sum(-2).view(n_b, W, H, n_o).permute(0, 3, 1, 2).  In
    # channel-major form that is exactly a reshape of the flat HW axis into
    # (W, H) -- no transpose needed.
    return out_cm.reshape(n_b, n_o, W, H)


def _reference(xs, params, channels_out, n_embed):
    """Pure-JAX reference mirroring the torch code line by line."""
    n_b, _, H, W = xs[0].shape
    n_o, n_e = channels_out, n_embed
    scl = 1.0 / math.sqrt(float(n_e))
    x_ts = [jnp.transpose(x, (0, 2, 3, 1)).reshape(n_b, H * W, -1) for x in xs]
    k = jnp.stack(
        [x @ params["wk"][i].T + params["bk"][i] for i, x in enumerate(x_ts)],
        axis=2)                                           # (n_b, HW, n_in, n_e)
    v = jnp.stack(
        [x @ params["wv"][i].T + params["bv"][i] for i, x in enumerate(x_ts)],
        axis=2)                                           # (n_b, HW, n_in, n_o)
    q = k @ params["wq"].T + params["bq"]                 # (n_b, HW, n_in, n_o)
    att = jax.nn.softmax(scl * q, axis=-1)
    out = (att * v).sum(-2).reshape(n_b, W, H, n_o)
    return jnp.transpose(out, (0, 3, 1, 2))


if __name__ == "__main__":
    key = jax.random.PRNGKey(0)

    def init_linear(k, out_f, in_f):
        k1, k2 = jax.random.split(k)
        bound = 1.0 / math.sqrt(in_f)
        w = jax.random.uniform(k1, (out_f, in_f), jnp.float32, -bound, bound)
        b = jax.random.uniform(k2, (out_f,), jnp.float32, -bound, bound)
        return w, b

    configs = [
        # (channels_in, channels_out, n_embed, n_b, H, W)
        ((4, 6), 8, 8, 2, 16, 16),    # square, HW a multiple of 128
        ((4, 6), 8, 8, 2, 12, 20),    # non-square + ragged HW (padding path)
        ((4, 6), 10, 6, 1, 12, 20),   # n_o not a multiple of 8, n_e != n_o
    ]

    for cfg_idx, (channels_in, channels_out, n_embed, n_b, H, W) in enumerate(configs):
        key, sub = jax.random.split(key)
        keys = iter(jax.random.split(sub, 4 * len(channels_in) + 4))

        params = {"wk": [], "bk": [], "wv": [], "bv": []}
        for c_in in channels_in:
            wk, bk = init_linear(next(keys), n_embed, c_in)
            wv, bv = init_linear(next(keys), channels_out, c_in)
            params["wk"].append(wk)
            params["bk"].append(bk)
            params["wv"].append(wv)
            params["bv"].append(bv)
        params["wq"], params["bq"] = init_linear(next(keys), channels_out, n_embed)

        xs = [jax.random.normal(next(keys), (n_b, c_in, H, W), jnp.float32)
              for c_in in channels_in]

        out = jax.block_until_ready(
            attention_fusion(xs, params, channels_out, n_embed))
        ref = _reference(xs, params, channels_out, n_embed)

        assert out.shape == (n_b, channels_out, W, H), (cfg_idx, out.shape)
        # Tolerance covers the EUP approximate reciprocal in the softmax
        # normalization (everything else is exact f32 algebra).
        assert jnp.allclose(out, ref, atol=2e-3, rtol=2e-3), \
            f"mismatch vs reference (config {cfg_idx})"

    print("KERNEL_OK")
</pallas_src>

<mosaic_0001>
module attributes {stable_mosaic.version = 11 : i64} {
  func.func @_attention_fusion_kernel(%arg0: i32, %arg1: i32, %arg2: memref<1x4x128xf32, #tpu.memory_space<vmem>>, %arg3: memref<1x6x128xf32, #tpu.memory_space<vmem>>, %arg4: memref<2x16x7xf32, #tpu.memory_space<vmem>>, %arg5: memref<1x8x128xf32, #tpu.memory_space<vmem>>) attributes {dimension_semantics = [#tpu.dimension_semantics<parallel>, #tpu.dimension_semantics<parallel>], iteration_bounds = array<i64: 2, 2>, scalar_prefetch = 0 : i64, scratch_operands = 0 : i64, tpu.core_type = #tpu.core_type<tc>, window_params = [{transform_indices = @transform_0, window_bounds = array<i64: 1, 4, 128>}, {transform_indices = @transform_1, window_bounds = array<i64: 1, 6, 128>}, {pipeline_mode = #tpu.pipeline_mode<synchronous>, transform_indices = @transform_2, window_bounds = array<i64: 2, 16, 7>}, {transform_indices = @transform_3, window_bounds = array<i64: 1, 8, 128>}]} {
    %cst = arith.constant 0.000000e+00 : f32
    %0 = vector.broadcast %cst : f32 to vector<8x128xf32>
    %c0 = arith.constant 0 : index
    %c0_0 = arith.constant 0 : index
    %c0_1 = arith.constant 0 : index
    %1 = vector.load %arg2[%c0, %c0_0, %c0_1] : memref<1x4x128xf32, #tpu.memory_space<vmem>>, vector<1x4x128xf32>
    %2 = vector.shape_cast %1 : vector<1x4x128xf32> to vector<4x128xf32>
    %c0_2 = arith.constant 0 : index
    %c0_3 = arith.constant 0 : index
    %c0_4 = arith.constant 0 : index
    %3 = vector.load %arg4[%c0_2, %c0_3, %c0_4] : memref<2x16x7xf32, #tpu.memory_space<vmem>>, vector<1x16x7xf32>
    %4 = vector.shape_cast %3 : vector<1x16x7xf32> to vector<16x7xf32>
    %5 = vector.extract_strided_slice %4 {offsets = [0, 0], sizes = [16, 4], strides = [1, 1]} : vector<16x7xf32> to vector<16x4xf32>
    %6 = vector.extract_strided_slice %4 {offsets = [0, 6], sizes = [16, 1], strides = [1, 1]} : vector<16x7xf32> to vector<16x1xf32>
    %cst_5 = arith.constant dense<0.000000e+00> : vector<16x128xf32>
    %7 = tpu.matmul %5, %2, %cst_5 {dimension_numbers = #tpu.dot_dimension_numbers<[1], [0], [0], [1], [0, 0, 1, 1], [], []>} : vector<16x4xf32>, vector<4x128xf32>, vector<16x128xf32> -> vector<16x128xf32>
    %8 = vector.broadcast %6 : vector<16x1xf32> to vector<16x128xf32>
    %9 = arith.addf %7, %8 : vector<16x128xf32>
    %10 = vector.extract_strided_slice %9 {offsets = [0, 0], sizes = [8, 128], strides = [1, 1]} : vector<16x128xf32> to vector<8x128xf32>
    %11 = vector.extract_strided_slice %9 {offsets = [8, 0], sizes = [8, 128], strides = [1, 1]} : vector<16x128xf32> to vector<8x128xf32>
    %cst_6 = arith.constant dense<0xFF800000> : vector<128xf32>
    %12 = vector.multi_reduction <maximumf>, %10, %cst_6 [0] : vector<8x128xf32> to vector<128xf32>
    %13 = vector.shape_cast %12 : vector<128xf32> to vector<1x128xf32>
    %14 = vector.broadcast %13 : vector<1x128xf32> to vector<8x128xf32>
    %15 = arith.subf %10, %14 : vector<8x128xf32>
    %16 = math.exp %15 : vector<8x128xf32>
    %cst_7 = arith.constant dense<0.000000e+00> : vector<128xf32>
    %17 = vector.multi_reduction <add>, %16, %cst_7 [0] : vector<8x128xf32> to vector<128xf32>
    %18 = vector.shape_cast %17 : vector<128xf32> to vector<1x128xf32>
    %19 = tpu.reciprocal %18 {approx = true} : vector<1x128xf32> -> vector<1x128xf32>
    %20 = vector.broadcast %19 : vector<1x128xf32> to vector<8x128xf32>
    %21 = arith.mulf %16, %20 : vector<8x128xf32>
    %22 = arith.mulf %21, %11 : vector<8x128xf32>
    %23 = arith.addf %0, %22 : vector<8x128xf32>
    %c0_8 = arith.constant 0 : index
    %c0_9 = arith.constant 0 : index
    %c0_10 = arith.constant 0 : index
    %24 = vector.load %arg3[%c0_8, %c0_9, %c0_10] : memref<1x6x128xf32, #tpu.memory_space<vmem>>, vector<1x6x128xf32>
    %25 = vector.shape_cast %24 : vector<1x6x128xf32> to vector<6x128xf32>
    %c1 = arith.constant 1 : index
    %c0_11 = arith.constant 0 : index
    %c0_12 = arith.constant 0 : index
    %26 = vector.load %arg4[%c1, %c0_11, %c0_12] : memref<2x16x7xf32, #tpu.memory_space<vmem>>, vector<1x16x7xf32>
    %27 = vector.shape_cast %26 : vector<1x16x7xf32> to vector<16x7xf32>
    %28 = vector.extract_strided_slice %27 {offsets = [0, 0], sizes = [16, 6], strides = [1, 1]} : vector<16x7xf32> to vector<16x6xf32>
    %29 = vector.extract_strided_slice %27 {offsets = [0, 6], sizes = [16, 1], strides = [1, 1]} : vector<16x7xf32> to vector<16x1xf32>
    %cst_13 = arith.constant dense<0.000000e+00> : vector<16x128xf32>
    %30 = tpu.matmul %28, %25, %cst_13 {dimension_numbers = #tpu.dot_dimension_numbers<[1], [0], [0], [1], [0, 0, 1, 1], [], []>} : vector<16x6xf32>, vector<6x128xf32>, vector<16x128xf32> -> vector<16x128xf32>
    %31 = vector.broadcast %29 : vector<16x1xf32> to vector<16x128xf32>
    %32 = arith.addf %30, %31 : vector<16x128xf32>
    %33 = vector.extract_strided_slice %32 {offsets = [0, 0], sizes = [8, 128], strides = [1, 1]} : vector<16x128xf32> to vector<8x128xf32>
    %34 = vector.extract_strided_slice %32 {offsets = [8, 0], sizes = [8, 128], strides = [1, 1]} : vector<16x128xf32> to vector<8x128xf32>
    %cst_14 = arith.constant dense<0xFF800000> : vector<128xf32>
    %35 = vector.multi_reduction <maximumf>, %33, %cst_14 [0] : vector<8x128xf32> to vector<128xf32>
    %36 = vector.shape_cast %35 : vector<128xf32> to vector<1x128xf32>
    %37 = vector.broadcast %36 : vector<1x128xf32> to vector<8x128xf32>
    %38 = arith.subf %33, %37 : vector<8x128xf32>
    %39 = math.exp %38 : vector<8x128xf32>
    %cst_15 = arith.constant dense<0.000000e+00> : vector<128xf32>
    %40 = vector.multi_reduction <add>, %39, %cst_15 [0] : vector<8x128xf32> to vector<128xf32>
    %41 = vector.shape_cast %40 : vector<128xf32> to vector<1x128xf32>
    %42 = tpu.reciprocal %41 {approx = true} : vector<1x128xf32> -> vector<1x128xf32>
    %43 = vector.broadcast %42 : vector<1x128xf32> to vector<8x128xf32>
    %44 = arith.mulf %39, %43 : vector<8x128xf32>
    %45 = arith.mulf %44, %34 : vector<8x128xf32>
    %46 = arith.addf %23, %45 : vector<8x128xf32>
    %c0_16 = arith.constant 0 : index
    %c0_17 = arith.constant 0 : index
    %c0_18 = arith.constant 0 : index
    %47 = vector.load %arg5[%c0_16, %c0_17, %c0_18] : memref<1x8x128xf32, #tpu.memory_space<vmem>>, vector<1x8x128xf32>
    %48 = vector.shape_cast %47 : vector<1x8x128xf32> to vector<8x128xf32>
    %49 = vector.shape_cast %46 : vector<8x128xf32> to vector<1x8x128xf32>
    tpu.vector_store %arg5[%c0_16, %c0_17, %c0_18], %49 {strides = array<i32>} : memref<1x8x128xf32, #tpu.memory_space<vmem>>, vector<1x8x128xf32>,
    return
  }
  func.func @transform_0(%arg0: i32, %arg1: i32) -> (i32, i32, i32) {
    %c0_i32 = arith.constant 0 : i32
    %c0_i32_0 = arith.constant 0 : i32
    return %arg0, %c0_i32, %arg1 : i32, i32, i32
  }
  func.func @transform_1(%arg0: i32, %arg1: i32) -> (i32, i32, i32) {
    %c0_i32 = arith.constant 0 : i32
    %c0_i32_0 = arith.constant 0 : i32
    return %arg0, %c0_i32, %arg1 : i32, i32, i32
  }
  func.func @transform_2(%arg0: i32, %arg1: i32) -> (i32, i32, i32) {
    %c0_i32 = arith.constant 0 : i32
    %c0_i32_0 = arith.constant 0 : i32
    %c0_i32_1 = arith.constant 0 : i32
    %c0_i32_2 = arith.constant 0 : i32
    return %c0_i32, %c0_i32_0, %c0_i32_1 : i32, i32, i32
  }
  func.func @transform_3(%arg0: i32, %arg1: i32) -> (i32, i32, i32) {
    %c0_i32 = arith.constant 0 : i32
    %c0_i32_0 = arith.constant 0 : i32
    return %arg0, %c0_i32, %arg1 : i32, i32, i32
  }
}

</mosaic_0001>

<bundles_post_ra>
// kernel: tpu_custom_call.1
= control target key start
LH: loop header
LB: loop body
LE: loop exit
PB: predicated region body
PF: predicated region fallthrough
CT: control target
= control target key end

     0   :  { %8 = vsyncpa [#allocation3], 0  ;;  %s966_s0 = inlined_call_operand.vmem [shape: f32[2,4,256], index: 0, kind: input, shape index: {}]   ;;  %s967_s1 = inlined_call_operand.vmem [shape: f32[2,6,256], index: 1, kind: input, shape index: {}]   ;;  %s968_s2 = inlined_call_operand.vmem [shape: f32[2,16,7], index: 2, kind: input, shape index: {}]   ;;  %s969_s3 = inlined_call_operand.hbm [shape: f32[2,8,256], index: 3, kind: output, shape index: {}]  }
   0x1   :  { %10 = vsyncpa [#allocation3 + $0x1], 0  ;;  %s810_s12 = smov 0   ;;  %s812_s13 = smov 0  }
   0x2   :  { %s814_s14 = smov 0   ;;  %s816_s15 = smov 0  }
   0x3   :  { %s818_s16 = smov 0   ;;  %s820_s17 = smov 0  }
   0x4   :  { %s822_s18 = smov 0   ;;  %s824_s19 = smov 0  }
   0x5 LB: > { %s571_s20 = sadd.s32 4294967295, %s786_s19   ;;  %s572_s21 = sadd.s32 4294967294, %s786_s19   ;;  %s786_s19 = sphi %s824_s19, %s16_s19   ;;  %s782_s18 = sphi %s822_s18, %s981_s18   ;;  %s778_s17 = sphi %s820_s17, %s980_s17   ;;  %s774_s16 = sphi %s818_s16, %s979_s16   ;;  %s770_s15 = sphi %s816_s15, %s978_s15   ;;  %s766_s14 = sphi %s814_s14, %s977_s14   ;;  %s762_s13 = sphi %s812_s13, %s976_s13   ;;  %s758_s12 = sphi %s810_s12, %s975_s12  }
   0x6   : > { %s25_s22 = sadd.s32 1, %s778_s17  ;;  %s28_s23 = sadd.s32 1, %s782_s18 }
   0x7   : > { %p26_p0 = scmp.ge.s32.totalorder %s25_s22, 2  ;;  %p124_p1 = scmp.ne.s32.totalorder %s766_s14, %s762_s13 }
   0x8   : > { %p125_p2 = scmp.eq.s32.totalorder %s571_s20, 3  ;;  %p130_p5 = scmp.ne.s32.totalorder %s762_s13, %s758_s12 }
   0x9   : > { %s983_s22 = smov (%p26_p0, %s25_s22), 0  ;;  %s985_s23 = smov (!%p26_p0, %s28_s23), %s782_s18 }
   0xa   : > { %s110_s24 = ssub.s32 %s778_s17, %s983_s22  ;;  %p861_p3 = por %p125_p2, %p124_p1 }
   0xb   : > { %p30_p4 = scmp.ge.s32.totalorder %s985_s23, 2  ;;  %p131_p6 = scmp.eq.s32.totalorder %s572_s21, 3 }
   0xc   : > { %p575_p7 = scmp.ge.s32.totalorder %s786_s19, 1  ;;  %p174_p9 = scmp.lt.s32.totalorder %s786_s19, 5 }
   0xd   : > { %s987_s23 = smov (%p30_p4, %s985_s23), 0  ;;  %p870_p8 = por %p131_p6, %p130_p5 }
   0xe   : > { %972 = sst [smem:[#allocation5_spill]] %s987_s23  ;;  %s109_s27 = ssub.s32 %s782_s18, %s987_s23 }
   0xf   : > { %s114_s28 = sadd.s32 1, %s766_s14  ;;  %s111_s29 = sor.u32 %s110_s24, %s109_s27 }
  0x10   : > { %p175_p10 = pnand %p575_p7, %p174_p9  ;;  %p112_p11 = scmp.eq.s32.totalorder %s111_s29, 0 }
  0x11   : > { %p209_p12 = scmp.lt.s32.totalorder (!%p175_p10), %s774_s16, 1  ;;  %p211_p13 = scmp.lt.s32.totalorder (!%p175_p10), %s770_s15, 1  ;;  %v226_v0 = vld [vmem:[%s968_s2] sm:$0xff] (!%p175_p10)  ;;  %vm238_vm0 = vcmask (!%p175_p10), 31744   ;;  %v584_v1 = vld [vmem:[%s968_s2 + $0x10] sm:$0xff] (!%p175_p10)  ;;  %vm355_vm1 = vcmask (!%p175_p10), 48128  }
  0x12   : > { %s879_s30 = scalar_select %p112_p11, %s766_s14, %s114_s28  }
  0x13   : > { %178 = sbr.rel (%p175_p10) target bundleno = 321 (0x141), region = 32  ;;  %602 = vmatprep.mubr.msk.f32.mxu0 (!%p175_p10), %vm238_vm0, %v226_v0  ;;  %607 = vmatprep.mubr.msk.f32.mxu1 (!%p175_p10), %vm355_vm1, %v584_v1  ;;  %v788_v2 = vmov (!%p175_p10), 6   ;;  %v227_v3 = vld [vmem:[%s968_s2 + $0x8] sm:$0xff] (!%p175_p10)  ;;  %vm243_vm2 = vcmask (!%p175_p10), 1043456   ;;  %vm360_vm3 = vcmask (!%p175_p10), 1045504   ;;  %v585_v4 = vld [vmem:[%s968_s2 + $0x18] sm:$0xff] (!%p175_p10) }
  0x14   : > { %682 = vset.pattern.permute.xlu0 (!%p175_p10), %v788_v2  ;;  %683 = vset.pattern.permute.xlu1 (!%p175_p10), %v788_v2  ;;  %s206_s23 = sand.u32 (!%p175_p10), 1, %s762_s13  }
  0x15   : > { %230 = vperm.xlu0 (!%p175_p10), %682, %v226_v0   ;;  %235 = vperm.xlu1 (!%p175_p10), %683, %v227_v3  }
  0x19   : > { %347 = vperm.xlu0 (!%p175_p10), %682, %v584_v1   ;;  %352 = vperm.xlu1 (!%p175_p10), %683, %v585_v4  }
  0x1a   : > { %s210_s8 = scalar_select %p209_p12, %s774_s16, 1 }
  0x1b   : > { %s212_s9 = scalar_select %p211_p13, %s770_s15, 1 }
  0x1c   : > { %s577_s20 = sshll.u32 %s210_s8, 1  ;;  %s576_s8 = sshll.u32 %s206_s23, 3 }
  0x1d   : > { %s214_s21 = sadd.s32 %s577_s20, %s212_s9  ;;  %s590_s9 = sshll.u32 %s774_s16, 1 }
  0x1e   : > { %s578_s24 = sshll.u32 %s214_s21, 2  ;;  %s580_s27 = sshll.u32 %s214_s21, 3 }
  0x1f   : > { %s216_s4 = scalar_lea.vmem %s966_s0, %s578_s24  ;;  %s224_s7 = scalar_lea.vmem %s967_s1, %s580_s27 }
  0x20   : > { %v225_v5 = vld [vmem:[%s216_s4] sm:$0xf]  ;;  %s471_s11 = sadd.s32 %s770_s15, %s590_s9  ;;  %s208_s21 = scalar_lea.vmem [#allocation2], %s576_s8 }
  0x21   : > { %v341_v6 = vld [vmem:[%s224_s7] sm:$0x3f]  ;;  %600 = vmatprep.subr.msk.mxu0 %vm243_vm2, %v225_v5  ;;  %s591_s20 = sshll.u32 %s471_s11, 7  ;;  %s475_s24 = sshll.u32 %s208_s21, 4  ;;  %s915_s24 = int_to_ptr.vmem [resolvable:$true] %s475_s24 }
  0x22   : > { %605 = vmatprep.subr.msk.mxu1 %vm360_vm3, %v341_v6  ;;  %601 = vmatpush3.msk.msra.mxu0 %vm243_vm2, %v225_v5  ;;  %s913_s29 = scalar_lea.hbm %s969_s3, %s591_s20  ;;  %s460_s15 = scalar_lea.sflag [#allocation3], %s206_s23 }
  0x23   : > { %606 = vmatpush3.msk.msra.mxu1 %vm360_vm3, %v341_v6  ;;  %603 = vmatmul.mubr.msk.f32.vlgmr.msra.gmra.mrb[0].mxu0 %vm238_vm0, %v227_v3  ;;  %s692_s16 = scalar_lea.vmem %s915_s24, 128  ;;  %s789_s4 = smov [#allocation2]  }
  0x24   : > { %608 = vmatmul.mubr.msk.f32.vlgmr.msra.gmra.mrb[0].mxu1 %vm355_vm1, %v585_v4  ;;  %p693_p0 = scmp.ne.s32.totalorder %s915_s24, %s692_s16  ;;  %s696_s5 = sshll.u32 %s789_s4, 4  ;;  %s697_s5 = int_to_ptr.vmem [resolvable:$false] %s696_s5 }
  0x25   : > { %s698_s6 = scalar_lea.vmem %s697_s5, 256  ;;  %p699_p4 = scmp.lt.s32.totalorder %s915_s24, %s697_s5 }
  0x26   : > { %p694_p1 = pnand %p693_p0, %p861_p3  ;;  %p700_p5 = scmp.lt.s32.totalorder %s698_s6, %s692_s16 }
  0x28   : > { %p695_p2 = pneg %p694_p1  ;;  %p701_p6 = por %p700_p5, %p699_p4 }
  0x2a   : > { %p702_p7 = pnand %p701_p6, %p695_p2 }
  0x94   : > { %v231_v7 = vpop.permute.xlu0 %230  ;;  %v236_v45 = vpop.permute.xlu1 %235 }
  0x98   : > { %v348_v8 = vpop.permute.xlu0 %347  ;;  %v353_v46 = vpop.permute.xlu1 %352 }
  0xf6   : > { %v604_v9 = vpop.f32.mrb[0].mxu0 }
  0xf7   : > { %v609_v10 = vpop.f32.mrb[0].mxu1  ;;  %v313_v11 = vpop.f32.mrb[1].mxu0  ;;  %v319_v49 = vadd.f32 %v604_v9, %v236_v45 }
  0xf8   : > { %v430_v12 = vpop.f32.mrb[1].mxu1  ;;  %v314_v13 = vadd.f32 %v313_v11, %v231_v7  ;;  %v436_v51 = vadd.f32 %v609_v10, %v353_v46 }
  0xf9   : > { %v431_v14 = vadd.f32 %v430_v12, %v348_v8 }
  0xfa   : > { %v322_v15 = vrot.slane %v314_v13, 4 }
  0xfb   : > { %v439_v16 = vrot.slane %v431_v14, 4 }
  0xfc   : > { %v323_v17 = vmax.f32 %v314_v13, %v322_v15 }
  0xfd   : > { %v440_v18 = vmax.f32 %v431_v14, %v439_v16 }
  0xfe   : > { %v324_v19 = vrot.slane %v323_v17, 2 }
  0xff   : > { %v441_v20 = vrot.slane %v440_v18, 2 }
 0x100   : > { %v325_v21 = vmax.f32 %v323_v17, %v324_v19 }
 0x101   : > { %v442_v22 = vmax.f32 %v440_v18, %v441_v20 }
 0x102   : > { %v326_v23 = vrot.slane %v325_v21, 1 }
 0x103   : > { %v443_v24 = vrot.slane %v442_v22, 1 }
 0x104   : > { %v327_v25 = vmax.f32 %v325_v21, %v326_v23 }
 0x105   : > { %v444_v26 = vmax.f32 %v442_v22, %v443_v24 }
 0x106   : > { %v328_v27 = vsub.f32 %v314_v13, %v327_v25 }
 0x107   : > { %v445_v28 = vsub.f32 %v431_v14, %v444_v26 }
 0x108   : > { %v329_v29 = vmul.f32 1.442695, %v328_v27 }
 0x109   : > { %v446_v30 = vmul.f32 1.442695, %v445_v28 }
 0x10a   : > { %684 = vpow2.f32 %v329_v29 }
 0x10b   : > { %686 = vpow2.f32 %v446_v30 }
 0x114   : > { %v685_v31 = vpop.eup %684 }
 0x115   : > { %v687_v32 = vpop.eup %686  ;;  %v331_v33 = vrot.slane %v685_v31, 4 }
 0x116   : > { %v448_v34 = vrot.slane %v687_v32, 4 }
 0x117   : > { %v332_v35 = vadd.f32 %v685_v31, %v331_v33 }
 0x118   : > { %v449_v36 = vadd.f32 %v687_v32, %v448_v34 }
 0x119   : > { %v333_v37 = vrot.slane %v332_v35, 2 }
 0x11a   : > { %v450_v38 = vrot.slane %v449_v36, 2 }
 0x11b   : > { %v334_v39 = vadd.f32 %v333_v37, %v332_v35 }
 0x11c   : > { %v451_v40 = vadd.f32 %v450_v38, %v449_v36 }
 0x11d   : > { %v335_v41 = vrot.slane %v334_v39, 1 }
 0x11e   : > { %v452_v42 = vrot.slane %v451_v40, 1 }
 0x11f   : > { %v336_v43 = vadd.f32 %v335_v41, %v334_v39 }
 0x120   : > { %v453_v44 = vadd.f32 %v452_v42, %v451_v40 }
 0x121   : > { %688 = vrcp.f32 %v336_v43 }
 0x122   : > { %690 = vrcp.f32 %v453_v44 }
 0x12b   : > { %v689_v47 = vpop.eup %688 }
 0x12c   : > { %v691_v48 = vpop.eup %690  ;;  %v338_v50 = vmul.f32 %v689_v47, %v685_v31 }
 0x12d   : > { %v455_v52 = vmul.f32 %v691_v48, %v687_v32 }
 0x12e   : > { %v339_v53 = vmul.f32 %v338_v50, %v319_v49 }
 0x12f   : > { %v456_v54 = vmul.f32 %v455_v52, %v436_v51 }
 0x131   : > { %v457_v55 = vadd.f32 %v456_v54, %v339_v53 }
 0x133   : > { %458 = vst [vmem:[%s208_s21] sm:$0xff] %v457_v55 }
 0x134   : > { %705 = shalt.err (!%p702_p7)
}
 0x135   : > { %s706_s7 = scalar_lea.hbm %s913_s29, 128  ;;  %s710_s8 = scalar_lea.hbm %s969_s3, 512 }
 0x136   : > { %p707_p9 = scmp.ne.s32.totalorder %s913_s29, %s706_s7  ;;  %p711_p12 = scmp.lt.u32.totalorder %s913_s29, %s969_s3 }
 0x137   : > { %p712_p13 = scmp.lt.u32.totalorder %s710_s8, %s706_s7  ;;  %p714_p1 = scmp.lt.u32.totalorder %s706_s7, %s913_s29 }
 0x138   : > { %p708_p10 = pnand %p707_p9, %p861_p3 }
 0x139   : > { %p713_p0 = por %p712_p13, %p711_p12 }
 0x13a   : > { %p709_p11 = pneg %p708_p10 }
 0x13b   : > { %p715_p2 = por %p714_p1, %p713_p0 }
 0x13d   : > { %p716_p4 = pnand %p715_p2, %p709_p11 }
 0x13f   : > { %719 = shalt.err (!%p716_p4)
}
 0x140   : > { %610 = dma.vmem_to_hbm [thread:$0]  (%p861_p3), %s915_s24, 128, %s913_s29, %s460_s15  }
 0x141 PF: > { %p616_p5 = scmp.ge.s32.totalorder %s786_s19, 2  ;;  %s487_s20 = sand.u32 1, %s758_s12  }
 0x142   : > { %s488_s21 = scalar_lea.sflag [#allocation3], %s487_s20 }
 0x143   : > { %p613_p6 = pnand %p616_p5, %p870_p8 }
 0x145   : > { %753 = dma.done.wait (!%p613_p6), %s488_s21, 128  }
 0x146   : > { %755 = vsyncadd (!%p613_p6), %s488_s21, 4294967168  ;;  %s16_s19 = sadd.s32 1, %s786_s19   ;;  %s974_s25 = sld [smem:[#allocation5_spill]] }
 0x147   : > { %p13_p7 = scmp.ge.s32.totalorder %s16_s19, 6   ;;  %s975_s12 = smov %s762_s13 }
 0x148   : > { %s976_s13 = smov %s766_s14  ;;  %s977_s14 = smov %s879_s30 }
 0x149   : > { %s978_s15 = smov %s778_s17  ;;  %s979_s16 = smov %s782_s18 }
 0x14a   : > { %s980_s17 = smov %s983_s22  ;;  %15 = sbr.rel (!%p13_p7) target bundleno = 5 (0x5), region = 71 }
 0x14c   : > { %s981_s18 = smov %s974_s25 }
 0x151   :  { %493 = vsyncpa [#allocation3], 1 }
 0x152   :  { %495 = vsyncpa [#allocation3 + $0x1], 1 }

</bundles_post_ra>
